<compile_context>
chip_gen: v7x
topology: tpu7x:2x2x1
jax: 0.10.0
libtpu: 0.0.40
codegen_flags: <defaults>
</compile_context>

<pallas_src>
import jax
import jax.numpy as jnp
from jax import lax
from jax.experimental import pallas as pl
from jax.experimental.pallas import tpu as pltpu


# ----------------------------- Pallas kernel ------------------------------ #

def stacking_rnn_kernel(ids_ref,    # (T*B, 1) int32, time-major token ids
                        table_ref,  # (V, 8H)  fused  emb @ [W_ih_f | W_ih_b] + b
                        whh_f_ref,  # (H, 4H)  forward W_hh (transposed for h @ W)
                        wout_ref,   # (H, C)   output Linear weight (transposed)
                        bout_ref,   # (1, C)
                        out_ref):   # (B, C)   softmax probabilities
    TB = ids_ref.shape[0]
    V = table_ref.shape[0]
    H = whh_f_ref.shape[0]
    B = out_ref.shape[0]
    T = TB // B
    G = 4 * H

    # ---- fused embedding-gather + input projection: one one-hot MXU matmul --- #
    ids = ids_ref[...]                                           # (TB, 1) int32
    lanes = lax.broadcasted_iota(jnp.int32, (TB, V), 1)
    onehot = (lanes == ids).astype(jnp.float32)                  # (TB, V)
    x_proj = jnp.dot(onehot, table_ref[...],
                     preferred_element_type=jnp.float32)         # (TB, 8H), bias folded

    whh_f = whh_f_ref[...]

    # ---- forward step 0, specialized for h0 = c0 = 0 (no h @ W_hh, c = i*g) --- #
    g0 = x_proj[0:B, 0:G]                                        # (B, 4H)
    s0 = jax.nn.sigmoid(g0)                                      # one EUP push (i|f|-|o)
    c = s0[:, 0:H] * jnp.tanh(g0[:, 2 * H:3 * H])                # c = i * g
    h = s0[:, 3 * H:4 * H] * jnp.tanh(c)                         # h = o * tanh(c)

    # ---- remaining forward steps, fully unrolled (T is static) ---- #
    # TODO(synk): whh_f is re-fed to the MXU every step; pltpu.matmul_push_rhs /
    # matmul_acc_lhs could pin it in the systolic array across the recurrence.
    for t in range(1, T):
        gates = (x_proj[t * B:(t + 1) * B, 0:G]                  # static slice
                 + jnp.dot(h, whh_f, preferred_element_type=jnp.float32))
        s = jax.nn.sigmoid(gates)                                # one push: i|f|-|o
        g = jnp.tanh(gates[:, 2 * H:3 * H])                      # one push: g band
        c = s[:, H:2 * H] * c + s[:, 0:H] * g                    # f*c + i*g
        h = s[:, 3 * H:4 * H] * jnp.tanh(c)                      # one push: tanh(c)
    h_fwd = h

    # ---- backward direction at t = T-1: first step from zero state ---- #
    # h0 @ W_hh_b == 0 and f*c0 == 0, so only the fused-table projection
    # contributes: c = i*g, h = o*tanh(c).
    gb = x_proj[(T - 1) * B:TB, G:2 * G]                         # (B, 4H)
    sb = jax.nn.sigmoid(gb)
    cb = sb[:, 0:H] * jnp.tanh(gb[:, 2 * H:3 * H])
    h_bwd = sb[:, 3 * H:4 * H] * jnp.tanh(cb)

    # ---- output head + softmax over classes ---- #
    h_sum = h_fwd + h_bwd                                        # (B, H)
    logits = (jnp.dot(h_sum, wout_ref[...],
                      preferred_element_type=jnp.float32) + bout_ref[...])   # (B, C)
    m = jnp.max(logits, axis=1, keepdims=True)
    e = jnp.exp(logits - m)
    out_ref[...] = e / jnp.sum(e, axis=1, keepdims=True)


# ------------------------- One-time parameter prep ------------------------- #

def prepare_params(params):
    """Hoisted, one-time fusion: embedding table x both input projections + bias
    collapse into a single (V, 8H) table the kernel gathers from via one-hot."""
    w_in = jnp.concatenate([params["w_ih_f"], params["w_ih_b"]], axis=1)   # (E, 8H)
    b_in = jnp.concatenate([params["b_f"], params["b_b"]], axis=1)         # (1, 8H)
    table = params["embedding"].astype(jnp.float32) @ w_in + b_in          # (V, 8H)
    return {
        "table": table,
        "w_hh_f": params["w_hh_f"],
        "w_out": params["w_out"],
        "b_out": params["b_out"],
    }


# ------------------------------ Wrapper ----------------------------------- #

def stacking_rnn_forward(input_seq, prep):
    """input_seq: int tokens (B, T). prep: output of prepare_params.
    Returns softmax probs (B, C)."""
    B, T = input_seq.shape
    C = prep["b_out"].shape[-1]

    # Only remaining per-call glue: time-major flatten of the (data-dependent)
    # token ids.  Everything weight-side is precomputed in prepare_params.
    ids_tm = jnp.transpose(input_seq.astype(jnp.int32)).reshape(T * B, 1)

    vmem = pl.BlockSpec(memory_space=pltpu.MemorySpace.VMEM)
    call = pl.pallas_call(
        stacking_rnn_kernel,
        out_shape=jax.ShapeDtypeStruct((B, C), jnp.float32),
        in_specs=[vmem] * 5,
        out_specs=vmem,
    )
    # TODO(synk): for large batches, add a grid over batch blocks with
    # dimension_semantics=("parallel",) to shard across v7x's two TensorCores
    # and fill the 256-wide MXU M dimension; at B=2 a gridless call is best.
    return call(ids_tm, prep["table"], prep["w_hh_f"], prep["w_out"],
                prep["b_out"])


stacking_rnn_forward_jit = jax.jit(stacking_rnn_forward)


# --------------------------- Pure-JAX reference ---------------------------- #

def _lstm_cell_ref(xt, h, c, wih, whh, b, H):
    gates = xt @ wih + h @ whh + b
    i = jax.nn.sigmoid(gates[:, 0 * H:1 * H])
    f = jax.nn.sigmoid(gates[:, 1 * H:2 * H])
    g = jnp.tanh(gates[:, 2 * H:3 * H])
    o = jax.nn.sigmoid(gates[:, 3 * H:4 * H])
    c_new = f * c + i * g
    return o * jnp.tanh(c_new), c_new


def reference_forward(input_seq, params, hidden_size):
    emb = params["embedding"][input_seq].astype(jnp.float32)     # (B, T, E)
    xt_seq = jnp.transpose(emb, (1, 0, 2))                       # (T, B, E)
    B = emb.shape[0]
    H = hidden_size
    h0 = jnp.zeros((B, H), jnp.float32)
    c0 = jnp.zeros((B, H), jnp.float32)

    def mk_step(wih, whh, b):
        def step(carry, xt):
            h, c = _lstm_cell_ref(xt, carry[0], carry[1], wih, whh, b, H)
            return (h, c), h
        return step

    _, hs_f = lax.scan(mk_step(params["w_ih_f"], params["w_hh_f"],
                               params["b_f"]), (h0, c0), xt_seq)
    _, hs_b_rev = lax.scan(mk_step(params["w_ih_b"], params["w_hh_b"],
                                   params["b_b"]), (h0, c0), xt_seq[::-1])
    hs_b = hs_b_rev[::-1]                                        # bwd hidden at t

    out_last = hs_f[-1] + hs_b[-1]                               # (B, H)
    logits = out_last @ params["w_out"] + params["b_out"]
    return jax.nn.softmax(logits, axis=1)


# ------------------------------- Main -------------------------------------- #

def make_params(key, num_words, embedding_size, hidden_size, classes):
    H, E, C = hidden_size, embedding_size, classes
    ks = jax.random.split(key, 10)
    s = 1.0 / jnp.sqrt(H)
    u = lambda k, shape: jax.random.uniform(k, shape, jnp.float32, -s, s)
    return {
        "embedding": jax.random.normal(ks[0], (num_words, E), jnp.float32),
        # PyTorch stores (4H, E)/(4H, H); we store transposed for x @ W.
        "w_ih_f": u(ks[1], (E, 4 * H)),
        "w_hh_f": u(ks[2], (H, 4 * H)),
        "b_f":    u(ks[3], (1, 4 * H)),   # = b_ih + b_hh fused
        "w_ih_b": u(ks[4], (E, 4 * H)),
        "w_hh_b": u(ks[5], (H, 4 * H)),   # unused by kernel (zero-state bwd step)
        "b_b":    u(ks[6], (1, 4 * H)),
        "w_out":  u(ks[7], (H, C)),
        "b_out":  u(ks[8], (1, C)),
    }


if __name__ == "__main__":
    batch, seq_len = 2, 8
    embedding_size, hidden_size, classes, num_words = 32, 32, 4, 50

    key = jax.random.PRNGKey(0)
    k_params, k_tokens = jax.random.split(key)
    params = make_params(k_params, num_words, embedding_size, hidden_size, classes)
    prep = prepare_params(params)            # one-time fused-table precompute
    input_seq = jax.random.randint(k_tokens, (batch, seq_len), 0, num_words,
                                   dtype=jnp.int32)

    out = stacking_rnn_forward_jit(input_seq, prep)
    out = jax.block_until_ready(out)

    ref = reference_forward(input_seq, params, hidden_size)
    assert out.shape == (batch, classes)
    assert jnp.allclose(out, ref, atol=1e-4, rtol=1e-4)
    assert jnp.allclose(jnp.sum(out, axis=1), 1.0, atol=1e-5)

    print("KERNEL_OK")
</pallas_src>

<mosaic_0001>
module attributes {stable_mosaic.version = 11 : i64} {
  func.func @stacking_rnn_kernel(%arg0: memref<16x1xi32, #tpu.memory_space<vmem>>, %arg1: memref<50x256xf32, #tpu.memory_space<vmem>>, %arg2: memref<32x128xf32, #tpu.memory_space<vmem>>, %arg3: memref<32x4xf32, #tpu.memory_space<vmem>>, %arg4: memref<1x4xf32, #tpu.memory_space<vmem>>, %arg5: memref<2x4xf32, #tpu.memory_space<vmem>>) attributes {dimension_semantics = [], scalar_prefetch = 0 : i64, scratch_operands = 0 : i64, tpu.core_type = #tpu.core_type<tc>} {
    %c0 = arith.constant 0 : index
    %c0_0 = arith.constant 0 : index
    %0 = vector.load %arg0[%c0, %c0_0] : memref<16x1xi32, #tpu.memory_space<vmem>>, vector<16x1xi32>
    %1 = tpu.iota {dimensions = array<i32: 1>} : vector<16x50xi32>
    %2 = vector.broadcast %0 : vector<16x1xi32> to vector<16x50xi32>
    %3 = arith.cmpi eq, %1, %2 : vector<16x50xi32>
    %4 = arith.extui %3 : vector<16x50xi1> to vector<16x50xi32>
    %5 = arith.sitofp %4 : vector<16x50xi32> to vector<16x50xf32>
    %c0_1 = arith.constant 0 : index
    %c0_2 = arith.constant 0 : index
    %6 = vector.load %arg1[%c0_1, %c0_2] : memref<50x256xf32, #tpu.memory_space<vmem>>, vector<50x256xf32>
    %cst = arith.constant dense<0.000000e+00> : vector<16x256xf32>
    %7 = tpu.matmul %5, %6, %cst {dimension_numbers = #tpu.dot_dimension_numbers<[1], [0], [0], [1], [0, 0, 1, 1], [], []>} : vector<16x50xf32>, vector<50x256xf32>, vector<16x256xf32> -> vector<16x256xf32>
    %c0_3 = arith.constant 0 : index
    %c0_4 = arith.constant 0 : index
    %8 = vector.load %arg2[%c0_3, %c0_4] : memref<32x128xf32, #tpu.memory_space<vmem>>, vector<32x128xf32>
    %9 = vector.extract_strided_slice %7 {offsets = [0, 0], sizes = [2, 128], strides = [1, 1]} : vector<16x256xf32> to vector<2x128xf32>
    %10 = arith.negf %9 : vector<2x128xf32>
    %11 = math.exp %10 : vector<2x128xf32>
    %cst_5 = arith.constant 1.000000e+00 : f32
    %12 = vector.broadcast %cst_5 : f32 to vector<2x128xf32>
    %13 = arith.addf %12, %11 : vector<2x128xf32>
    %14 = arith.divf %12, %13 : vector<2x128xf32>
    %15 = vector.extract_strided_slice %14 {offsets = [0, 0], sizes = [2, 32], strides = [1, 1]} : vector<2x128xf32> to vector<2x32xf32>
    %16 = vector.extract_strided_slice %9 {offsets = [0, 64], sizes = [2, 32], strides = [1, 1]} : vector<2x128xf32> to vector<2x32xf32>
    %17 = math.tanh %16 : vector<2x32xf32>
    %18 = arith.mulf %15, %17 : vector<2x32xf32>
    %19 = vector.extract_strided_slice %14 {offsets = [0, 96], sizes = [2, 32], strides = [1, 1]} : vector<2x128xf32> to vector<2x32xf32>
    %20 = math.tanh %18 : vector<2x32xf32>
    %21 = arith.mulf %19, %20 : vector<2x32xf32>
    %22 = vector.extract_strided_slice %7 {offsets = [2, 0], sizes = [2, 128], strides = [1, 1]} : vector<16x256xf32> to vector<2x128xf32>
    %cst_6 = arith.constant dense<0.000000e+00> : vector<2x128xf32>
    %23 = tpu.matmul %21, %8, %cst_6 {dimension_numbers = #tpu.dot_dimension_numbers<[1], [0], [0], [1], [0, 0, 1, 1], [], []>} : vector<2x32xf32>, vector<32x128xf32>, vector<2x128xf32> -> vector<2x128xf32>
    %24 = arith.addf %22, %23 : vector<2x128xf32>
    %25 = arith.negf %24 : vector<2x128xf32>
    %26 = math.exp %25 : vector<2x128xf32>
    %cst_7 = arith.constant 1.000000e+00 : f32
    %27 = vector.broadcast %cst_7 : f32 to vector<2x128xf32>
    %28 = arith.addf %27, %26 : vector<2x128xf32>
    %29 = arith.divf %27, %28 : vector<2x128xf32>
    %30 = vector.extract_strided_slice %24 {offsets = [0, 64], sizes = [2, 32], strides = [1, 1]} : vector<2x128xf32> to vector<2x32xf32>
    %31 = math.tanh %30 : vector<2x32xf32>
    %32 = vector.extract_strided_slice %29 {offsets = [0, 32], sizes = [2, 32], strides = [1, 1]} : vector<2x128xf32> to vector<2x32xf32>
    %33 = arith.mulf %32, %18 : vector<2x32xf32>
    %34 = vector.extract_strided_slice %29 {offsets = [0, 0], sizes = [2, 32], strides = [1, 1]} : vector<2x128xf32> to vector<2x32xf32>
    %35 = arith.mulf %34, %31 : vector<2x32xf32>
    %36 = arith.addf %33, %35 : vector<2x32xf32>
    %37 = vector.extract_strided_slice %29 {offsets = [0, 96], sizes = [2, 32], strides = [1, 1]} : vector<2x128xf32> to vector<2x32xf32>
    %38 = math.tanh %36 : vector<2x32xf32>
    %39 = arith.mulf %37, %38 : vector<2x32xf32>
    %40 = vector.extract_strided_slice %7 {offsets = [4, 0], sizes = [2, 128], strides = [1, 1]} : vector<16x256xf32> to vector<2x128xf32>
    %cst_8 = arith.constant dense<0.000000e+00> : vector<2x128xf32>
    %41 = tpu.matmul %39, %8, %cst_8 {dimension_numbers = #tpu.dot_dimension_numbers<[1], [0], [0], [1], [0, 0, 1, 1], [], []>} : vector<2x32xf32>, vector<32x128xf32>, vector<2x128xf32> -> vector<2x128xf32>
    %42 = arith.addf %40, %41 : vector<2x128xf32>
    %43 = arith.negf %42 : vector<2x128xf32>
    %44 = math.exp %43 : vector<2x128xf32>
    %cst_9 = arith.constant 1.000000e+00 : f32
    %45 = vector.broadcast %cst_9 : f32 to vector<2x128xf32>
    %46 = arith.addf %45, %44 : vector<2x128xf32>
    %47 = arith.divf %45, %46 : vector<2x128xf32>
    %48 = vector.extract_strided_slice %42 {offsets = [0, 64], sizes = [2, 32], strides = [1, 1]} : vector<2x128xf32> to vector<2x32xf32>
    %49 = math.tanh %48 : vector<2x32xf32>
    %50 = vector.extract_strided_slice %47 {offsets = [0, 32], sizes = [2, 32], strides = [1, 1]} : vector<2x128xf32> to vector<2x32xf32>
    %51 = arith.mulf %50, %36 : vector<2x32xf32>
    %52 = vector.extract_strided_slice %47 {offsets = [0, 0], sizes = [2, 32], strides = [1, 1]} : vector<2x128xf32> to vector<2x32xf32>
    %53 = arith.mulf %52, %49 : vector<2x32xf32>
    %54 = arith.addf %51, %53 : vector<2x32xf32>
    %55 = vector.extract_strided_slice %47 {offsets = [0, 96], sizes = [2, 32], strides = [1, 1]} : vector<2x128xf32> to vector<2x32xf32>
    %56 = math.tanh %54 : vector<2x32xf32>
    %57 = arith.mulf %55, %56 : vector<2x32xf32>
    %58 = vector.extract_strided_slice %7 {offsets = [6, 0], sizes = [2, 128], strides = [1, 1]} : vector<16x256xf32> to vector<2x128xf32>
    %cst_10 = arith.constant dense<0.000000e+00> : vector<2x128xf32>
    %59 = tpu.matmul %57, %8, %cst_10 {dimension_numbers = #tpu.dot_dimension_numbers<[1], [0], [0], [1], [0, 0, 1, 1], [], []>} : vector<2x32xf32>, vector<32x128xf32>, vector<2x128xf32> -> vector<2x128xf32>
    %60 = arith.addf %58, %59 : vector<2x128xf32>
    %61 = arith.negf %60 : vector<2x128xf32>
    %62 = math.exp %61 : vector<2x128xf32>
    %cst_11 = arith.constant 1.000000e+00 : f32
    %63 = vector.broadcast %cst_11 : f32 to vector<2x128xf32>
    %64 = arith.addf %63, %62 : vector<2x128xf32>
    %65 = arith.divf %63, %64 : vector<2x128xf32>
    %66 = vector.extract_strided_slice %60 {offsets = [0, 64], sizes = [2, 32], strides = [1, 1]} : vector<2x128xf32> to vector<2x32xf32>
    %67 = math.tanh %66 : vector<2x32xf32>
    %68 = vector.extract_strided_slice %65 {offsets = [0, 32], sizes = [2, 32], strides = [1, 1]} : vector<2x128xf32> to vector<2x32xf32>
    %69 = arith.mulf %68, %54 : vector<2x32xf32>
    %70 = vector.extract_strided_slice %65 {offsets = [0, 0], sizes = [2, 32], strides = [1, 1]} : vector<2x128xf32> to vector<2x32xf32>
    %71 = arith.mulf %70, %67 : vector<2x32xf32>
    %72 = arith.addf %69, %71 : vector<2x32xf32>
    %73 = vector.extract_strided_slice %65 {offsets = [0, 96], sizes = [2, 32], strides = [1, 1]} : vector<2x128xf32> to vector<2x32xf32>
    %74 = math.tanh %72 : vector<2x32xf32>
    %75 = arith.mulf %73, %74 : vector<2x32xf32>
    %76 = vector.extract_strided_slice %7 {offsets = [8, 0], sizes = [2, 128], strides = [1, 1]} : vector<16x256xf32> to vector<2x128xf32>
    %cst_12 = arith.constant dense<0.000000e+00> : vector<2x128xf32>
    %77 = tpu.matmul %75, %8, %cst_12 {dimension_numbers = #tpu.dot_dimension_numbers<[1], [0], [0], [1], [0, 0, 1, 1], [], []>} : vector<2x32xf32>, vector<32x128xf32>, vector<2x128xf32> -> vector<2x128xf32>
    %78 = arith.addf %76, %77 : vector<2x128xf32>
    %79 = arith.negf %78 : vector<2x128xf32>
    %80 = math.exp %79 : vector<2x128xf32>
    %cst_13 = arith.constant 1.000000e+00 : f32
    %81 = vector.broadcast %cst_13 : f32 to vector<2x128xf32>
    %82 = arith.addf %81, %80 : vector<2x128xf32>
    %83 = arith.divf %81, %82 : vector<2x128xf32>
    %84 = vector.extract_strided_slice %78 {offsets = [0, 64], sizes = [2, 32], strides = [1, 1]} : vector<2x128xf32> to vector<2x32xf32>
    %85 = math.tanh %84 : vector<2x32xf32>
    %86 = vector.extract_strided_slice %83 {offsets = [0, 32], sizes = [2, 32], strides = [1, 1]} : vector<2x128xf32> to vector<2x32xf32>
    %87 = arith.mulf %86, %72 : vector<2x32xf32>
    %88 = vector.extract_strided_slice %83 {offsets = [0, 0], sizes = [2, 32], strides = [1, 1]} : vector<2x128xf32> to vector<2x32xf32>
    %89 = arith.mulf %88, %85 : vector<2x32xf32>
    %90 = arith.addf %87, %89 : vector<2x32xf32>
    %91 = vector.extract_strided_slice %83 {offsets = [0, 96], sizes = [2, 32], strides = [1, 1]} : vector<2x128xf32> to vector<2x32xf32>
    %92 = math.tanh %90 : vector<2x32xf32>
    %93 = arith.mulf %91, %92 : vector<2x32xf32>
    %94 = vector.extract_strided_slice %7 {offsets = [10, 0], sizes = [2, 128], strides = [1, 1]} : vector<16x256xf32> to vector<2x128xf32>
    %cst_14 = arith.constant dense<0.000000e+00> : vector<2x128xf32>
    %95 = tpu.matmul %93, %8, %cst_14 {dimension_numbers = #tpu.dot_dimension_numbers<[1], [0], [0], [1], [0, 0, 1, 1], [], []>} : vector<2x32xf32>, vector<32x128xf32>, vector<2x128xf32> -> vector<2x128xf32>
    %96 = arith.addf %94, %95 : vector<2x128xf32>
    %97 = arith.negf %96 : vector<2x128xf32>
    %98 = math.exp %97 : vector<2x128xf32>
    %cst_15 = arith.constant 1.000000e+00 : f32
    %99 = vector.broadcast %cst_15 : f32 to vector<2x128xf32>
    %100 = arith.addf %99, %98 : vector<2x128xf32>
    %101 = arith.divf %99, %100 : vector<2x128xf32>
    %102 = vector.extract_strided_slice %96 {offsets = [0, 64], sizes = [2, 32], strides = [1, 1]} : vector<2x128xf32> to vector<2x32xf32>
    %103 = math.tanh %102 : vector<2x32xf32>
    %104 = vector.extract_strided_slice %101 {offsets = [0, 32], sizes = [2, 32], strides = [1, 1]} : vector<2x128xf32> to vector<2x32xf32>
    %105 = arith.mulf %104, %90 : vector<2x32xf32>
    %106 = vector.extract_strided_slice %101 {offsets = [0, 0], sizes = [2, 32], strides = [1, 1]} : vector<2x128xf32> to vector<2x32xf32>
    %107 = arith.mulf %106, %103 : vector<2x32xf32>
    %108 = arith.addf %105, %107 : vector<2x32xf32>
    %109 = vector.extract_strided_slice %101 {offsets = [0, 96], sizes = [2, 32], strides = [1, 1]} : vector<2x128xf32> to vector<2x32xf32>
    %110 = math.tanh %108 : vector<2x32xf32>
    %111 = arith.mulf %109, %110 : vector<2x32xf32>
    %112 = vector.extract_strided_slice %7 {offsets = [12, 0], sizes = [2, 128], strides = [1, 1]} : vector<16x256xf32> to vector<2x128xf32>
    %cst_16 = arith.constant dense<0.000000e+00> : vector<2x128xf32>
    %113 = tpu.matmul %111, %8, %cst_16 {dimension_numbers = #tpu.dot_dimension_numbers<[1], [0], [0], [1], [0, 0, 1, 1], [], []>} : vector<2x32xf32>, vector<32x128xf32>, vector<2x128xf32> -> vector<2x128xf32>
    %114 = arith.addf %112, %113 : vector<2x128xf32>
    %115 = arith.negf %114 : vector<2x128xf32>
    %116 = math.exp %115 : vector<2x128xf32>
    %cst_17 = arith.constant 1.000000e+00 : f32
    %117 = vector.broadcast %cst_17 : f32 to vector<2x128xf32>
    %118 = arith.addf %117, %116 : vector<2x128xf32>
    %119 = arith.divf %117, %118 : vector<2x128xf32>
    %120 = vector.extract_strided_slice %114 {offsets = [0, 64], sizes = [2, 32], strides = [1, 1]} : vector<2x128xf32> to vector<2x32xf32>
    %121 = math.tanh %120 : vector<2x32xf32>
    %122 = vector.extract_strided_slice %119 {offsets = [0, 32], sizes = [2, 32], strides = [1, 1]} : vector<2x128xf32> to vector<2x32xf32>
    %123 = arith.mulf %122, %108 : vector<2x32xf32>
    %124 = vector.extract_strided_slice %119 {offsets = [0, 0], sizes = [2, 32], strides = [1, 1]} : vector<2x128xf32> to vector<2x32xf32>
    %125 = arith.mulf %124, %121 : vector<2x32xf32>
    %126 = arith.addf %123, %125 : vector<2x32xf32>
    %127 = vector.extract_strided_slice %119 {offsets = [0, 96], sizes = [2, 32], strides = [1, 1]} : vector<2x128xf32> to vector<2x32xf32>
    %128 = math.tanh %126 : vector<2x32xf32>
    %129 = arith.mulf %127, %128 : vector<2x32xf32>
    %130 = vector.extract_strided_slice %7 {offsets = [14, 0], sizes = [2, 128], strides = [1, 1]} : vector<16x256xf32> to vector<2x128xf32>
    %cst_18 = arith.constant dense<0.000000e+00> : vector<2x128xf32>
    %131 = tpu.matmul %129, %8, %cst_18 {dimension_numbers = #tpu.dot_dimension_numbers<[1], [0], [0], [1], [0, 0, 1, 1], [], []>} : vector<2x32xf32>, vector<32x128xf32>, vector<2x128xf32> -> vector<2x128xf32>
    %132 = arith.addf %130, %131 : vector<2x128xf32>
    %133 = arith.negf %132 : vector<2x128xf32>
    %134 = math.exp %133 : vector<2x128xf32>
    %cst_19 = arith.constant 1.000000e+00 : f32
    %135 = vector.broadcast %cst_19 : f32 to vector<2x128xf32>
    %136 = arith.addf %135, %134 : vector<2x128xf32>
    %137 = arith.divf %135, %136 : vector<2x128xf32>
    %138 = vector.extract_strided_slice %132 {offsets = [0, 64], sizes = [2, 32], strides = [1, 1]} : vector<2x128xf32> to vector<2x32xf32>
    %139 = math.tanh %138 : vector<2x32xf32>
    %140 = vector.extract_strided_slice %137 {offsets = [0, 32], sizes = [2, 32], strides = [1, 1]} : vector<2x128xf32> to vector<2x32xf32>
    %141 = arith.mulf %140, %126 : vector<2x32xf32>
    %142 = vector.extract_strided_slice %137 {offsets = [0, 0], sizes = [2, 32], strides = [1, 1]} : vector<2x128xf32> to vector<2x32xf32>
    %143 = arith.mulf %142, %139 : vector<2x32xf32>
    %144 = arith.addf %141, %143 : vector<2x32xf32>
    %145 = vector.extract_strided_slice %137 {offsets = [0, 96], sizes = [2, 32], strides = [1, 1]} : vector<2x128xf32> to vector<2x32xf32>
    %146 = math.tanh %144 : vector<2x32xf32>
    %147 = arith.mulf %145, %146 : vector<2x32xf32>
    %148 = vector.extract_strided_slice %7 {offsets = [14, 128], sizes = [2, 128], strides = [1, 1]} : vector<16x256xf32> to vector<2x128xf32>
    %149 = arith.negf %148 : vector<2x128xf32>
    %150 = math.exp %149 : vector<2x128xf32>
    %cst_20 = arith.constant 1.000000e+00 : f32
    %151 = vector.broadcast %cst_20 : f32 to vector<2x128xf32>
    %152 = arith.addf %151, %150 : vector<2x128xf32>
    %153 = arith.divf %151, %152 : vector<2x128xf32>
    %154 = vector.extract_strided_slice %153 {offsets = [0, 0], sizes = [2, 32], strides = [1, 1]} : vector<2x128xf32> to vector<2x32xf32>
    %155 = vector.extract_strided_slice %148 {offsets = [0, 64], sizes = [2, 32], strides = [1, 1]} : vector<2x128xf32> to vector<2x32xf32>
    %156 = math.tanh %155 : vector<2x32xf32>
    %157 = arith.mulf %154, %156 : vector<2x32xf32>
    %158 = vector.extract_strided_slice %153 {offsets = [0, 96], sizes = [2, 32], strides = [1, 1]} : vector<2x128xf32> to vector<2x32xf32>
    %159 = math.tanh %157 : vector<2x32xf32>
    %160 = arith.mulf %158, %159 : vector<2x32xf32>
    %161 = arith.addf %147, %160 : vector<2x32xf32>
    %c0_21 = arith.constant 0 : index
    %c0_22 = arith.constant 0 : index
    %162 = vector.load %arg3[%c0_21, %c0_22] : memref<32x4xf32, #tpu.memory_space<vmem>>, vector<32x4xf32>
    %cst_23 = arith.constant dense<0.000000e+00> : vector<2x4xf32>
    %163 = tpu.matmul %161, %162, %cst_23 {dimension_numbers = #tpu.dot_dimension_numbers<[1], [0], [0], [1], [0, 0, 1, 1], [], []>} : vector<2x32xf32>, vector<32x4xf32>, vector<2x4xf32> -> vector<2x4xf32>
    %c0_24 = arith.constant 0 : index
    %c0_25 = arith.constant 0 : index
    %164 = vector.load %arg4[%c0_24, %c0_25] : memref<1x4xf32, #tpu.memory_space<vmem>>, vector<1x4xf32>
    %165 = vector.broadcast %164 : vector<1x4xf32> to vector<2x4xf32>
    %166 = arith.addf %163, %165 : vector<2x4xf32>
    %cst_26 = arith.constant dense<0xFF800000> : vector<2xf32>
    %167 = vector.multi_reduction <maximumf>, %166, %cst_26 [1] : vector<2x4xf32> to vector<2xf32>
    %168 = vector.shape_cast %167 : vector<2xf32> to vector<2x1xf32>
    %169 = vector.broadcast %168 : vector<2x1xf32> to vector<2x4xf32>
    %170 = arith.subf %166, %169 : vector<2x4xf32>
    %171 = math.exp %170 : vector<2x4xf32>
    %cst_27 = arith.constant dense<0.000000e+00> : vector<2xf32>
    %172 = vector.multi_reduction <add>, %171, %cst_27 [1] : vector<2x4xf32> to vector<2xf32>
    %173 = vector.shape_cast %172 : vector<2xf32> to vector<2x1xf32>
    %174 = vector.broadcast %173 : vector<2x1xf32> to vector<2x4xf32>
    %175 = arith.divf %171, %174 : vector<2x4xf32>
    %c0_28 = arith.constant 0 : index
    %c0_29 = arith.constant 0 : index
    %176 = vector.load %arg5[%c0_28, %c0_29] : memref<2x4xf32, #tpu.memory_space<vmem>>, vector<2x4xf32>
    tpu.vector_store %arg5[%c0_28, %c0_29], %175 {strides = array<i32>} : memref<2x4xf32, #tpu.memory_space<vmem>>, vector<2x4xf32>,
    return
  }
}

</mosaic_0001>

<bundles_post_ra>
// kernel: stacking_rnn_forward.1
= control target key start
LH: loop header
LB: loop body
LE: loop exit
PB: predicated region body
PF: predicated region fallthrough
CT: control target
= control target key end

     0   :  { %10 = vsyncpa [#allocation3], 0  ;;  %s1626_s0 = inlined_call_operand.vmem [shape: s32[16,1], index: 0, kind: input, shape index: {}]   ;;  %s1627_s1 = inlined_call_operand.hbm [shape: f32[50,256], index: 1, kind: input, shape index: {}]   ;;  %s1628_s2 = inlined_call_operand.vmem [shape: f32[32,128], index: 2, kind: input, shape index: {}]   ;;  %s1629_s3 = inlined_call_operand.vmem [shape: f32[32,4], index: 3, kind: input, shape index: {}]   ;;  %s1630_s4 = inlined_call_operand.vmem [shape: f32[1,4], index: 4, kind: input, shape index: {}]   ;;  %s1631_s5 = inlined_call_operand.hbm [shape: f32[2,4], index: 5, kind: output, shape index: {}]  }
   0x1   :  { %11 = vsyncpa [#allocation4], 0  ;;  %s1406_s18 = smov [#allocation2]   ;;  %s1358_s22 = scalar_lea.hbm %s1627_s1, 1792 }
   0x2   :  { %s19_s19 = sshll.u32 %s1406_s18, 4  ;;  %p1359_p0 = scmp.ne.s32.totalorder %s1627_s1, %s1358_s22  ;;  %s20_s19 = int_to_ptr.vmem [resolvable:$true] %s19_s19 }
   0x3   :  { %p1362_p1 = scmp.lt.u32.totalorder %s1358_s22, %s1627_s1 }
   0x5   :  { %p1364_p2 = pnand %p1362_p1, %p1359_p0 }
   0x7   :  { %1367 = shalt.err (!%p1364_p2)
}
   0x8   :  { %s1368_s27 = scalar_lea.vmem %s20_s19, 1792  ;;  %p1373_p4 = scmp.lt.s32.totalorder %s20_s19, %s20_s19 }
   0x9   :  { %p1369_p3 = scmp.ne.s32.totalorder %s20_s19, %s1368_s27  ;;  %p1374_p5 = scmp.lt.s32.totalorder %s1368_s27, %s1368_s27 }
   0xb   :  { %p1375_p6 = por %p1374_p5, %p1373_p4 }
   0xd   :  { %p1376_p7 = pnand %p1375_p6, %p1369_p3 }
   0xf   :  { %1379 = shalt.err (!%p1376_p7)
}
  0x10   :  { %s1407_s28 = smov 256   ;;  %s1408_s29 = smov 16  }
  0x11   :  { %25 = dma.hbm_to_vmem [thread:$0]  %s1627_s1, 1792, %s20_s19, [#allocation3], %s1407_s28, %s1407_s28, %s1408_s29  }
  0x12   :  { %1402 = dma.done.wait [#allocation3], 1792  }
  0x13   :  { %1403 = vsyncadd [#allocation3], 4294965504  ;;  %v1409_v0 = vmov 0   ;;  %v1410_v1 = vmov 0.0   ;;  %v35_v2 = vld [vmem:[%s1626_s0] sm:$0xff]  ;;  %v52_v3 = vld [vmem:[#allocation2 + $0x8] sm:$0xff]  ;;  %v37_v23 = vlaneseq }
  0x14   :  { %1281 = vset.pattern.permute.xlu0 %v1409_v0  ;;  %143 = vmatprep.mubr.f32.mxu0 %v1410_v1  ;;  %v54_v4 = vld [vmem:[#allocation2 + $0x18] sm:$0xff]  ;;  %v51_v6 = vld [vmem:[#allocation2] sm:$0xff]  ;;  %v53_v7 = vld [vmem:[#allocation2 + $0x10] sm:$0xff]  ;;  %vm72_vm0 = vcmask 1041408   ;;  %vm65_vm1 = vcmask 408576   ;;  %s1411_s1 = smov 64  }
  0x15   :  { %40 = vperm.xlu0 %1281, %v35_v2   ;;  %v1210_v5 = vpack.c.bf16 %v54_v4, %v52_v3  ;;  %v56_v8 = vld [vmem:[#allocation2 + $0x28] sm:$0xff]  ;;  %v1212_v9 = vpack.c.bf16 %v53_v7, %v51_v6  ;;  %v58_v10 = vld [vmem:[#allocation2 + $0x38] sm:$0xff]  ;;  %v55_v11 = vld [vmem:[#allocation2 + $0x20] sm:$0xff]  ;;  %v1463_v24 = vand.u32 127, %v37_v23  ;;  %v1412_v39 = vmov 0.0|0.0   ;;  %s1414_s17 = smov 96  }
  0x16   :  { %v57_v12 = vld [vmem:[#allocation2 + $0x30] sm:$0xff]  ;;  %v1214_v13 = vpack.c.bf16 %v58_v10, %v56_v8  ;;  %v60_v14 = vld [vmem:[#allocation2 + $0x48] sm:$0xff]  ;;  %v62_v15 = vld [vmem:[#allocation2 + $0x58] sm:$0xff]  ;;  %1222 = vmatprep.subr.bf16.mxu1 %v1412_v39  ;;  %vm1413_vm3 = vmmov 0   ;;  %vm180_vm4 = vcmask 261120   ;;  %vm1030_vm6 = vcmask 25600  }
  0x17   :  { %1211 = vmatprep.subr.bf16.mxu0 %v1210_v5  ;;  %v1216_v16 = vpack.c.bf16 %v57_v12, %v55_v11  ;;  %v1218_v17 = vpack.c.bf16 %v62_v15, %v60_v14  ;;  %v59_v18 = vld [vmem:[#allocation2 + $0x40] sm:$0xff]  ;;  %v61_v19 = vld [vmem:[#allocation2 + $0x50] sm:$0xff]  ;;  %v64_v21 = vld [vmem:[#allocation2 + $0x68] sm:$0x3]  ;;  %1130 = vmatprep.mubr.msk.f32.mxu1 %vm1413_vm3, %v1410_v1  ;;  %s1416_s28 = smov [#allocation5]  }
  0x18   :  { %1213 = vmatpush1.bf16.msra.mxu0 %v1212_v9  ;;  %v1220_v20 = vpack.c.bf16 %v61_v19, %v59_v18  ;;  %v63_v22 = vld [vmem:[#allocation2 + $0x60] sm:$0x3]  ;;  %v156_v37 = vld [vmem:[%s1628_s2 + $0x8] sm:$0xff]  ;;  %v157_v38 = vld [vmem:[%s1628_s2 + $0x10] sm:$0xff]  ;;  %s1049_s29 = sshll.u32 %s1416_s28, 4  ;;  %s1050_s29 = int_to_ptr.vmem [resolvable:$true] %s1049_s29 }
  0x19   :  { %1215 = vmatprep.subr.bf16.mxu0 %v1214_v13  ;;  %v155_v36 = vld [vmem:[%s1628_s2] sm:$0xff]  ;;  %v158_v41 = vld [vmem:[%s1628_s2 + $0x18] sm:$0xff]  ;;  %s1415_s2 = smov 32   ;;  %p1385_p9 = scmp.lt.s32.totalorder %s1050_s29, %s1050_s29 }
  0x1a   :  { %v1484_v40 = vpack.c.bf16 %v156_v37, %v155_v36  ;;  %v1493_v42 = vpack.c.bf16 %v158_v41, %v157_v38 }
  0x1c   :  { %1217 = vmatpush1.bf16.msra.mxu0 %v1216_v16  ;;  %1224 = vmatpush3.bf16.msra.mxu1 %v1484_v40  ;;  %v36_v16 = vld [vmem:[%s1626_s0 + $0x8] sm:$0xff] }
  0x1d   :  { %1219 = vmatprep.subr.bf16.mxu0 %v1218_v17  ;;  %1225 = vmatprep.subr.bf16.mxu1 %v1412_v39 }
  0x20   :  { %1221 = vmatpush1.bf16.msra.mxu0 %v1220_v20  ;;  %1227 = vmatpush3.bf16.msra.mxu1 %v1493_v42 }
  0x21   :  { %1060 = vmatprep.subr.msk.mxu0 %vm72_vm0, %v64_v21  ;;  %1228 = vmatprep.subr.bf16.mxu1 %v1412_v39 }
  0x24   :  { %1061 = vmatpush1.msk.msra.mxu0 %vm72_vm0, %v63_v22 }
  0x25   :  { %1234 = vmatprep.subr.bf16.mxu0 %v1412_v39 }
  0x94   :  { %v41_v25 = vpop.permute.xlu0 %40 }
  0x95   :  { %vm45_vm2 = vcmp.eq.s32.totalorder %v1463_v24, %v41_v25 }
  0x96   :  { %v1058_v26 = vsel %vm45_vm2, 1.0, %v1410_v1 }
  0x97   :  { %1062 = vmatmul.mubr.msk.f32.vlgmr.msra.gmra.mrb[0].mxu0 %vm65_vm1, %v1058_v26 }
  0x98   :  { %148 = vmatprep.mubr.f32.mxu0 %v1410_v1  ;;  %1236 = vmatpush3.bf16.msra.mxu0 %v1484_v40 }
  0x99   :  { %1237 = vmatprep.subr.bf16.mxu0 %v1412_v39 }
  0x9c   :  { %1239 = vmatpush3.bf16.msra.mxu0 %v1493_v42 }
  0x9d   :  { %1246 = vmatprep.subr.bf16.mxu0 %v1412_v39 }
 0x16a   :  { %v1469_v27 = vpop.f32.mrb[0].mxu0 }
 0x16b   :  { %1282 = vtanh.f32 %v1469_v27  ;;  %v147_v28 = vpop.f32.mrb[1].mxu0  ;;  %v1064_v30 = vmul.f32 -1.442695, %v1469_v27 }
 0x16d   :  { %1284 = vpow2.f32 %v1064_v30 }
 0x175   :  { %v1283_v29 = vpop.eup %1282 }
 0x176   :  { %167 = vrot.lane.b32.xlu0 %v1283_v29, %s1411_s1 }
 0x177   :  { %v1285_v31 = vpop.eup %1284 }
 0x178   :  { %v162_v32 = vadd.f32 1.0, %v1285_v31 }
 0x17a   :  { %1286 = vrcp.f32 %v162_v32 }
 0x184   :  { %v1287_v33 = vpop.eup %1286 }
 0x1e8   :  { %v168_v34 = vpop.permute.xlu0 %167 }
 0x1e9   :  { %v170_v35 = vmul.f32 %v1287_v33, %v168_v34 }
 0x1eb   :  { %1288 = vtanh.f32 %v170_v35  ;;  %v265_v46 = vrot.slane %v170_v35, 6 }
 0x1f5   :  { %v1289_v43 = vpop.eup %1288 }
 0x1f6   :  { %173 = vrot.lane.b32.xlu1 %v1289_v43, %s1414_s17 }
 0x268   :  { %v174_v44 = vpop.permute.xlu1 %173 }
 0x269   :  { %v176_v45 = vmul.f32 %v1287_v33, %v174_v44 }
 0x26b   :  { %178 = vrot.lane.b32.xlu1 %v176_v45, %s1415_s2 }
 0x26f   :  { %266 = vrot.lane.b32.xlu1 %v265_v46, %s1415_s2 }
 0x2dd   :  { %v179_v47 = vpop.permute.xlu1 %178 }
 0x2de   :  { %1131 = vmatmul.mubr.msk.f32.vlgmr.msra.gmra.mrb[0].mxu1 %vm180_vm4, %v179_v47 }
 0x2df   :  { %1230 = vmatpush3.bf16.msra.mxu1 %v1484_v40  ;;  %1141 = vmatprep.mubr.msk.f32.mxu1 %vm1413_vm3, %v1410_v1 }
 0x2e0   :  { %1231 = vmatprep.subr.bf16.mxu1 %v1412_v39 }
 0x2e1   :  { %v267_v59 = vpop.permute.xlu1 %266 }
 0x2e3   :  { %1233 = vmatpush3.bf16.msra.mxu1 %v1493_v42 }
 0x2e4   :  { %1240 = vmatprep.subr.bf16.mxu1 %v1412_v39 }
 0x3b1   :  { %v249_v48 = vpop.f32.mrb[0].mxu1 }
 0x3b2   :  { %v254_v49 = vrot.slane %v249_v48, 6  ;;  %v1132_v50 = vpop.f32.mrb[1].mxu1 }
 0x3b4   :  { %v256_v51 = vadd.f32 %v254_v49, %v1469_v27 }
 0x3b6   :  { %1290 = vtanh.f32 %v256_v51  ;;  %v1066_v53 = vmul.f32 -1.442695, %v256_v51 }
 0x3b8   :  { %1292 = vpow2.f32 %v1066_v53 }
 0x3c0   :  { %v1291_v52 = vpop.eup %1290 }
 0x3c1   :  { %271 = vrot.lane.b32.xlu0 %v1291_v52, %s1411_s1 }
 0x3c2   :  { %v1293_v54 = vpop.eup %1292 }
 0x3c3   :  { %v260_v55 = vadd.f32 1.0, %v1293_v54 }
 0x3c5   :  { %1294 = vrcp.f32 %v260_v55 }
 0x3cf   :  { %v1295_v56 = vpop.eup %1294 }
 0x3d0   :  { %v269_v60 = vmul.f32 %v1295_v56, %v267_v59 }
 0x433   :  { %v272_v57 = vpop.permute.xlu0 %271 }
 0x434   :  { %v274_v58 = vmul.f32 %v1295_v56, %v272_v57 }
 0x436   :  { %276 = vrot.lane.b32.xlu0 %v274_v58, %s1415_s2 }
 0x4a8   :  { %v277_v61 = vpop.permute.xlu0 %276 }
 0x4a9   :  { %v279_v62 = vadd.f32 %v277_v61, %v269_v60 }
 0x4ab   :  { %1296 = vtanh.f32 %v279_v62  ;;  %v374_v17 = vrot.slane %v279_v62, 6 }
 0x4b5   :  { %v1297_v63 = vpop.eup %1296 }
 0x4b6   :  { %282 = vrot.lane.b32.xlu1 %v1297_v63, %s1411_s1 }
 0x528   :  { %v283_v0 = vpop.permute.xlu1 %282 }
 0x529   :  { %v285_v2 = vmul.f32 %v1295_v56, %v283_v0 }
 0x52b   :  { %v287_v3 = vrot.slane %v285_v2, 2 }
 0x52d   :  { %288 = vrot.lane.b32.xlu0 %v287_v3, %s1415_s2 }
 0x59f   :  { %v289_v4 = vpop.permute.xlu0 %288 }
 0x5a0   :  { %1142 = vmatmul.mubr.msk.f32.vlgmr.msra.gmra.mrb[2].mxu1 %vm180_vm4, %v289_v4 }
 0x5a1   :  { %1242 = vmatpush3.bf16.msra.mxu1 %v1484_v40  ;;  %1163 = vmatprep.mubr.msk.f32.mxu1 %vm1413_vm3, %v1410_v1 }
 0x5a2   :  { %1243 = vmatprep.subr.bf16.mxu1 %v1412_v39 }
 0x5a5   :  { %1245 = vmatpush3.bf16.msra.mxu1 %v1493_v42 }
 0x5a6   :  { %1252 = vmatprep.subr.bf16.mxu1 %v1412_v39 }
 0x673   :  { %v358_v5 = vpop.f32.mrb[2].mxu1 }
 0x674   :  { %v363_v6 = vrot.slane %v358_v5, 4  ;;  %v1143_v7 = vpop.f32.mrb[3].mxu1 }
 0x676   :  { %v365_v8 = vadd.f32 %v363_v6, %v1469_v27 }
 0x678   :  { %1298 = vtanh.f32 %v365_v8  ;;  %v1068_v10 = vmul.f32 -1.442695, %v365_v8 }
 0x67a   :  { %1300 = vpow2.f32 %v1068_v10 }
 0x682   :  { %v1299_v9 = vpop.eup %1298 }
 0x683   :  { %378 = vrot.lane.b32.xlu1 %v1299_v9, %s1411_s1 }
 0x684   :  { %v1301_v11 = vpop.eup %1300 }
 0x685   :  { %v369_v12 = vadd.f32 1.0, %v1301_v11 }
 0x687   :  { %1302 = vrcp.f32 %v369_v12 }
 0x691   :  { %v1303_v13 = vpop.eup %1302 }
 0x692   :  { %v376_v18 = vmul.f32 %v1303_v13, %v374_v17 }
 0x6f5   :  { %v379_v14 = vpop.permute.xlu1 %378 }
 0x6f6   :  { %v381_v15 = vmul.f32 %v1303_v13, %v379_v14 }
 0x6f8   :  { %383 = vrot.lane.b32.xlu0 %v381_v15, %s1415_s2 }
 0x6fc   :  { %43 = vperm.xlu0 %1281, %v36_v16  }
 0x76a   :  { %v384_v19 = vpop.permute.xlu0 %383 }
 0x76b   :  { %v386_v20 = vadd.f32 %v384_v19, %v376_v18 }
 0x76d   :  { %1304 = vtanh.f32 %v386_v20  ;;  %v481_v45 = vrot.slane %v386_v20, 6 }
 0x777   :  { %v1305_v21 = vpop.eup %1304 }
 0x778   :  { %389 = vrot.lane.b32.xlu1 %v1305_v21, %s1411_s1 }
 0x77b   :  { %v44_v22 = vpop.permute.xlu0 %43 }
 0x77c   :  { %vm46_vm5 = vcmp.eq.s32.totalorder %v1463_v24, %v44_v22 }
 0x77d   :  { %v1059_v23 = vsel %vm46_vm5, 1.0, %v1410_v1 }
 0x77e   :  { %1063 = vmatmul.mubr.msk.f32.gmra.mrb[2].mxu0 %vm65_vm1, %v1059_v23 }
 0x77f   :  { %1152 = vmatprep.mubr.msk.f32.mxu0 %vm1413_vm3, %v1410_v1 }
 0x7ea   :  { %v390_v25 = vpop.permute.xlu1 %389 }
 0x7eb   :  { %v392_v26 = vmul.f32 %v1303_v13, %v390_v25 }
 0x7ed   :  { %v394_v28 = vrot.slane %v392_v26, 4 }
 0x7ef   :  { %395 = vrot.lane.b32.xlu1 %v394_v28, %s1415_s2 }
 0x851   :  { %v1537_v29 = vpop.f32.mrb[2].mxu0 }
 0x852   :  { %v1539_v30 = vpop.f32.mrb[3].mxu0 }
 0x861   :  { %v396_v31 = vpop.permute.xlu1 %395 }
 0x862   :  { %1153 = vmatmul.mubr.msk.f32.vlgmr.msra.gmra.mrb[4].mxu0 %vm180_vm4, %v396_v31 }
 0x863   :  { %1248 = vmatpush3.bf16.msra.mxu0 %v1484_v40  ;;  %1174 = vmatprep.mubr.msk.f32.mxu0 %vm1413_vm3, %v1410_v1 }
 0x864   :  { %1249 = vmatprep.subr.bf16.mxu0 %v1412_v39 }
 0x867   :  { %1251 = vmatpush3.bf16.msra.mxu0 %v1493_v42 }
 0x868   :  { %1258 = vmatprep.subr.bf16.mxu0 %v1412_v39 }
 0x935   :  { %v465_v24 = vpop.f32.mrb[4].mxu0 }
 0x936   :  { %v470_v32 = vrot.slane %v465_v24, 2  ;;  %v1154_v33 = vpop.f32.mrb[5].mxu0 }
 0x938   :  { %v472_v34 = vadd.f32 %v470_v32, %v1469_v27 }
 0x93a   :  { %1306 = vtanh.f32 %v472_v34  ;;  %v1070_v36 = vmul.f32 -1.442695, %v472_v34 }
 0x93c   :  { %1308 = vpow2.f32 %v1070_v36 }
 0x944   :  { %v1307_v35 = vpop.eup %1306 }
 0x945   :  { %485 = vrot.lane.b32.xlu0 %v1307_v35, %s1411_s1 }
 0x946   :  { %v1309_v37 = vpop.eup %1308 }
 0x947   :  { %v476_v38 = vadd.f32 1.0, %v1309_v37 }
 0x949   :  { %1310 = vrcp.f32 %v476_v38 }
 0x953   :  { %v1311_v41 = vpop.eup %1310 }
 0x954   :  { %v483_v46 = vmul.f32 %v1311_v41, %v481_v45 }
 0x9b7   :  { %v486_v43 = vpop.permute.xlu0 %485 }
 0x9b8   :  { %v488_v44 = vmul.f32 %v1311_v41, %v486_v43 }
 0x9ba   :  { %490 = vrot.lane.b32.xlu1 %v488_v44, %s1415_s2 }
 0xa2c   :  { %v491_v47 = vpop.permute.xlu1 %490 }
 0xa2d   :  { %v493_v48 = vadd.f32 %v491_v47, %v483_v46 }
 0xa2f   :  { %1312 = vtanh.f32 %v493_v48  ;;  %v585_v63 = vrot.slane %v493_v48, 6 }
 0xa39   :  { %v1313_v27 = vpop.eup %1312 }
 0xa3a   :  { %496 = vrot.lane.b32.xlu0 %v1313_v27, %s1411_s1 }
 0xaac   :  { %v497_v49 = vpop.permute.xlu0 %496 }
 0xaad   :  { %v499_v50 = vmul.f32 %v1311_v41, %v497_v49 }
 0xaaf   :  { %v501_v51 = vrot.slane %v499_v50, 6 }
 0xab1   :  { %502 = vrot.lane.b32.xlu1 %v501_v51, %s1415_s2 }
 0xb23   :  { %v503_v52 = vpop.permute.xlu1 %502 }
 0xb24   :  { %1164 = vmatmul.mubr.msk.f32.vlgmr.msra.gmra.mrb[4].mxu1 %vm180_vm4, %v503_v52 }
 0xb25   :  { %1254 = vmatpush3.bf16.msra.mxu1 %v1484_v40  ;;  %1185 = vmatprep.mubr.msk.f32.mxu1 %vm1413_vm3, %v1410_v1 }
 0xb26   :  { %1255 = vmatprep.subr.bf16.mxu1 %v1412_v39 }
 0xb29   :  { %1257 = vmatpush3.bf16.msra.mxu1 %v1493_v42 }
 0xb2a   :  { %1264 = vmatprep.subr.bf16.mxu1 %v1412_v39 }
 0xbf7   :  { %v572_v53 = vpop.f32.mrb[4].mxu1 }
 0xbf8   :  { %v576_v54 = vadd.f32 %v572_v53, %v1537_v29  ;;  %v1165_v55 = vpop.f32.mrb[5].mxu1 }
 0xbfa   :  { %1314 = vtanh.f32 %v576_v54  ;;  %v1072_v57 = vmul.f32 -1.442695, %v576_v54 }
 0xbfc   :  { %1316 = vpow2.f32 %v1072_v57  ;;  %v1079_v57 = vmul.f32 -1.442695, %v1539_v30 }
 0xc04   :  { %v1315_v56 = vpop.eup %1314 }
 0xc05   :  { %589 = vrot.lane.b32.xlu0 %v1315_v56, %s1411_s1 }
 0xc06   :  { %v1317_v58 = vpop.eup %1316 }
 0xc07   :  { %v580_v59 = vadd.f32 1.0, %v1317_v58 }
 0xc09   :  { %1318 = vrcp.f32 %v580_v59 }
 0xc13   :  { %v1319_v60 = vpop.eup %1318 }
 0xc14   :  { %v587_v0 = vmul.f32 %v1319_v60, %v585_v63 }
 0xc77   :  { %v590_v61 = vpop.permute.xlu0 %589 }
 0xc78   :  { %v592_v62 = vmul.f32 %v1319_v60, %v590_v61 }
 0xc7a   :  { %594 = vrot.lane.b32.xlu1 %v592_v62, %s1415_s2 }
 0xcec   :  { %v595_v2 = vpop.permute.xlu1 %594 }
 0xced   :  { %v597_v3 = vadd.f32 %v595_v2, %v587_v0 }
 0xcef   :  { %1320 = vtanh.f32 %v597_v3 }
 0xcf9   :  { %v1321_v4 = vpop.eup %1320 }
 0xcfa   :  { %600 = vrot.lane.b32.xlu0 %v1321_v4, %s1411_s1 }
 0xd6c   :  { %v601_v5 = vpop.permute.xlu0 %600 }
 0xd6d   :  { %v603_v6 = vmul.f32 %v1319_v60, %v601_v5 }
 0xd6f   :  { %605 = vrot.lane.b32.xlu1 %v603_v6, %s1415_s2 }
 0xde1   :  { %v606_v7 = vpop.permute.xlu1 %605 }
 0xde2   :  { %1175 = vmatmul.mubr.msk.f32.vlgmr.msra.gmra.mrb[6].mxu0 %vm180_vm4, %v606_v7 }
 0xde3   :  { %1260 = vmatpush3.bf16.msra.mxu0 %v1484_v40  ;;  %1196 = vmatprep.mubr.msk.f32.mxu0 %vm1413_vm3, %v1410_v1 }
 0xde4   :  { %1261 = vmatprep.subr.bf16.mxu0 %v1412_v39 }
 0xde7   :  { %1263 = vmatpush3.bf16.msra.mxu0 %v1493_v42  ;;  %v691_v42 = vrot.slane %v597_v3, 6 }
 0xeb5   :  { %v675_v8 = vpop.f32.mrb[6].mxu0 }
 0xeb6   :  { %v680_v9 = vrot.slane %v675_v8, 6  ;;  %v1176_v10 = vpop.f32.mrb[7].mxu0  ;;  %v943_v8 = vld [vmem:[%s1629_s3] sm:$0xff] }
 0xeb7   :  { %v945_v10 = vld [vmem:[%s1629_s3 + $0x10] sm:$0xff] }
 0xeb8   :  { %v682_v11 = vadd.f32 %v680_v9, %v1537_v29  ;;  %v944_v9 = vld [vmem:[%s1629_s3 + $0x8] sm:$0xff] }
 0xeba   :  { %1322 = vtanh.f32 %v682_v11  ;;  %v1074_v13 = vmul.f32 -1.442695, %v682_v11  ;;  %v1265_v11 = vpack.c.bf16 %v944_v9, %v943_v8 }
 0xebc   :  { %1324 = vpow2.f32 %v1074_v13 }
 0xec4   :  { %v1323_v12 = vpop.eup %1322 }
 0xec5   :  { %695 = vrot.lane.b32.xlu0 %v1323_v12, %s1411_s1  ;;  %v946_v12 = vld [vmem:[%s1629_s3 + $0x18] sm:$0xff] }
 0xec6   :  { %v1325_v14 = vpop.eup %1324  ;;  %v1268_v13 = vpack.c.bf16 %v946_v12, %v945_v10 }
 0xec7   :  { %v686_v40 = vadd.f32 1.0, %v1325_v14 }
 0xec9   :  { %1326 = vrcp.f32 %v686_v40 }
 0xed3   :  { %v1327_v15 = vpop.eup %1326 }
 0xed4   :  { %v693_v18 = vmul.f32 %v1327_v15, %v691_v42 }
 0xf37   :  { %v696_v16 = vpop.permute.xlu0 %695 }
 0xf38   :  { %v698_v17 = vmul.f32 %v1327_v15, %v696_v16 }
 0xf3a   :  { %700 = vrot.lane.b32.xlu1 %v698_v17, %s1415_s2 }
 0xfac   :  { %v701_v19 = vpop.permute.xlu1 %700 }
 0xfad   :  { %v703_v20 = vadd.f32 %v701_v19, %v693_v18 }
 0xfaf   :  { %1328 = vtanh.f32 %v703_v20 }
 0xfb9   :  { %v1329_v21 = vpop.eup %1328 }
 0xfba   :  { %706 = vrot.lane.b32.xlu0 %v1329_v21, %s1411_s1 }
0x102c   :  { %v707_v22 = vpop.permute.xlu0 %706 }
0x102d   :  { %v709_v23 = vmul.f32 %v1327_v15, %v707_v22 }
0x102f   :  { %v711_v25 = vrot.slane %v709_v23, 2 }
0x1031   :  { %712 = vrot.lane.b32.xlu1 %v711_v25, %s1415_s2 }
0x10a3   :  { %v713_v26 = vpop.permute.xlu1 %712 }
0x10a4   :  { %1186 = vmatmul.mubr.msk.f32.vlgmr.msra.gmra.mrb[6].mxu1 %vm180_vm4, %v713_v26 }
0x10a5   :  { %1207 = vmatprep.mubr.msk.f32.mxu1 %vm1413_vm3, %v1410_v1  ;;  %v798_v1 = vrot.slane %v703_v20, 6  ;;  %1266 = vmatpush3.bf16.msra.mxu1 %v1265_v11  ;;  %v1080_v20 = vld [vmem:[%s1630_s4] ss:$0 sm:$0xff]  ;;  %s1380_s4 = scalar_lea.vmem %s1050_s29, 32 }
0x10a6   :  { %1267 = vmatprep.subr.bf16.mxu1 %v1412_v39  ;;  %p1381_p8 = scmp.ne.s32.totalorder %s1050_s29, %s1380_s4  ;;  %p1386_p10 = scmp.lt.s32.totalorder %s1380_s4, %s1380_s4 }
0x10a8   :  { %p1387_p11 = por %p1386_p10, %p1385_p9 }
0x10a9   :  { %1269 = vmatpush3.bf16.msra.mxu1 %v1268_v13 }
0x10aa   :  { %p1388_p12 = pnand %p1387_p11, %p1381_p8 }
0x1177   :  { %v782_v28 = vpop.f32.mrb[6].mxu1 }
0x1178   :  { %v787_v31 = vrot.slane %v782_v28, 4  ;;  %v1187_v24 = vpop.f32.mrb[7].mxu1 }
0x117a   :  { %v789_v32 = vadd.f32 %v787_v31, %v1537_v29 }
0x117c   :  { %1330 = vtanh.f32 %v789_v32  ;;  %v1076_v34 = vmul.f32 -1.442695, %v789_v32 }
0x117e   :  { %1332 = vpow2.f32 %v1076_v34 }
0x1186   :  { %v1331_v33 = vpop.eup %1330 }
0x1187   :  { %802 = vrot.lane.b32.xlu0 %v1331_v33, %s1411_s1 }
0x1188   :  { %v1333_v35 = vpop.eup %1332 }
0x1189   :  { %v793_v36 = vadd.f32 1.0, %v1333_v35 }
0x118b   :  { %1334 = vrcp.f32 %v793_v36 }
0x1195   :  { %v1335_v37 = vpop.eup %1334 }
0x1196   :  { %v800_v43 = vmul.f32 %v1335_v37, %v798_v1 }
0x11f9   :  { %v803_v38 = vpop.permute.xlu0 %802 }
0x11fa   :  { %v805_v41 = vmul.f32 %v1335_v37, %v803_v38 }
0x11fc   :  { %807 = vrot.lane.b32.xlu1 %v805_v41, %s1415_s2 }
0x126e   :  { %v808_v44 = vpop.permute.xlu1 %807 }
0x126f   :  { %v810_v45 = vadd.f32 %v808_v44, %v800_v43 }
0x1271   :  { %1336 = vtanh.f32 %v810_v45 }
0x127b   :  { %v1337_v46 = vpop.eup %1336 }
0x127c   :  { %813 = vrot.lane.b32.xlu0 %v1337_v46, %s1411_s1 }
0x12ee   :  { %v814_v47 = vpop.permute.xlu0 %813 }
0x12ef   :  { %v816_v48 = vmul.f32 %v1335_v37, %v814_v47 }
0x12f1   :  { %v818_v27 = vrot.slane %v816_v48, 4 }
0x12f3   :  { %819 = vrot.lane.b32.xlu1 %v818_v27, %s1415_s2 }
0x1365   :  { %v820_v49 = vpop.permute.xlu1 %819 }
0x1366   :  { %1197 = vmatmul.mubr.msk.f32.vlgmr.msra.gmra.mrb[8].mxu0 %vm180_vm4, %v820_v49 }
0x1439   :  { %v889_v50 = vpop.f32.mrb[8].mxu0 }
0x143a   :  { %v894_v51 = vrot.slane %v889_v50, 2  ;;  %v1198_v52 = vpop.f32.mrb[9].mxu0 }
0x143c   :  { %v896_v53 = vadd.f32 %v894_v51, %v1537_v29 }
0x143e   :  { %1338 = vtanh.f32 %v896_v53  ;;  %v1078_v56 = vmul.f32 -1.442695, %v896_v53 }
0x143f   :  { %1340 = vtanh.f32 %v1539_v30  ;;  %v905_v30 = vrot.slane %v810_v45, 6 }
0x1440   :  { %1342 = vpow2.f32 %v1078_v56 }
0x1441   :  { %1344 = vpow2.f32 %v1079_v57 }
0x1448   :  { %v1339_v54 = vpop.eup %1338 }
0x1449   :  { %909 = vrot.lane.b32.xlu0 %v1339_v54, %s1411_s1  ;;  %v1341_v55 = vpop.eup %1340 }
0x144a   :  { %v1343_v58 = vpop.eup %1342 }
0x144b   :  { %v900_v59 = vadd.f32 1.0, %v1343_v58  ;;  %v1345_v60 = vpop.eup %1344 }
0x144c   :  { %v927_v61 = vadd.f32 1.0, %v1345_v60 }
0x144d   :  { %932 = vrot.lane.b32.xlu0 %v1341_v55, %s1411_s1  ;;  %1346 = vrcp.f32 %v900_v59 }
0x144e   :  { %1348 = vrcp.f32 %v927_v61 }
0x1457   :  { %v1347_v29 = vpop.eup %1346 }
0x1458   :  { %v1349_v0 = vpop.eup %1348  ;;  %v907_v5 = vmul.f32 %v1347_v29, %v905_v30 }
0x14bb   :  { %v910_v62 = vpop.permute.xlu0 %909 }
0x14bc   :  { %v912_v63 = vmul.f32 %v1347_v29, %v910_v62 }
0x14be   :  { %914 = vrot.lane.b32.xlu1 %v912_v63, %s1415_s2 }
0x14bf   :  { %v933_v2 = vpop.permute.xlu0 %932 }
0x14c0   :  { %v935_v3 = vmul.f32 %v1349_v0, %v933_v2 }
0x14c2   :  { %1350 = vtanh.f32 %v935_v3 }
0x14cc   :  { %v1351_v4 = vpop.eup %1350 }
0x14cd   :  { %938 = vrot.lane.b32.xlu0 %v1351_v4, %s1414_s17 }
0x1530   :  { %v915_v6 = vpop.permute.xlu1 %914 }
0x1531   :  { %v917_v7 = vadd.f32 %v915_v6, %v907_v5 }
0x1533   :  { %1352 = vtanh.f32 %v917_v7 }
0x153d   :  { %v1353_v14 = vpop.eup %1352 }
0x153e   :  { %920 = vrot.lane.b32.xlu1 %v1353_v14, %s1411_s1 }
0x153f   :  { %v939_v40 = vpop.permute.xlu0 %938 }
0x1540   :  { %v941_v16 = vmul.f32 %v1349_v0, %v939_v40 }
0x15b0   :  { %v921_v15 = vpop.permute.xlu1 %920 }
0x15b1   :  { %v923_v17 = vmul.f32 %v1347_v29, %v921_v15 }
0x15b3   :  { %v942_v42 = vadd.f32 %v941_v16, %v923_v17 }
0x15b5   :  { %v955_v18 = vrot.slane %v942_v42, 6 }
0x15b7   :  { %956 = vrot.lane.b32.xlu1 %v955_v18, %s1415_s2 }
0x1629   :  { %v957_v19 = vpop.permute.xlu1 %956 }
0x162a   :  { %1208 = vmatmul.mubr.msk.f32.vlgmr.msra.gmra.mrb[8].mxu1 %vm180_vm4, %v957_v19 }
0x16fd   :  { %v1026_v39 = vpop.f32.mrb[8].mxu1 }
0x16fe   :  { %v1027_v21 = vadd.f32 %v1080_v20, %v1026_v39  ;;  %v1209_v22 = vpop.f32.mrb[9].mxu1 }
0x1700   :  { %v1031_v23 = vsel %vm1030_vm6, %v1027_v21, -inf }
0x1701   :  { %1032 = vmax.xlane.f32.xlu0 %v1031_v23 }
0x178e   :  { %v1033_v25 = vpop.xlane.xlu0 %1032 }
0x178f   :  { %v1034_v26 = vsub.f32 %v1027_v21, %v1033_v25 }
0x1791   :  { %v1035_v28 = vmul.f32 1.442695, %v1034_v26 }
0x1793   :  { %1354 = vpow2.f32 %v1035_v28 }
0x179d   :  { %v1355_v31 = vpop.eup %1354 }
0x179e   :  { %v1037_v24 = vsel %vm1030_vm6, %v1355_v31, 0.0 }
0x179f   :  { %1038 = vadd.xlane.f32.xlu1 %v1037_v24 }
0x182c   :  { %v1039_v32 = vpop.xlane.xlu1 %1038 }
0x182d   :  { %1356 = vrcp.f32 %v1039_v32 }
0x1837   :  { %v1357_v33 = vpop.eup %1356 }
0x1838   :  { %v1041_v34 = vmul.f32 %v1357_v33, %v1355_v31 }
0x183a   :  { %1042 = vst.msk [vmem:[#allocation5] sm:$0x3] %vm1030_vm6, %v1041_v34 }
0x183b   :  { %1391 = shalt.err (!%p1388_p12)
}
0x183c   :  { %s1392_s7 = scalar_lea.hbm %s1631_s5, 32 }
0x183d   :  { %p1393_p13 = scmp.ne.s32.totalorder %s1631_s5, %s1392_s7  ;;  %p1396_p0 = scmp.lt.u32.totalorder %s1392_s7, %s1631_s5 }
0x183f   :  { %p1398_p1 = pnand %p1396_p0, %p1393_p13 }
0x1841   :  { %1401 = shalt.err (!%p1398_p1)
}
0x1842   :  { %1052 = dma.vmem_to_hbm [thread:$0]  %s1050_s29, 32, %s1631_s5, [#allocation4]  }
0x1843   :  { %1404 = dma.done.wait [#allocation4], 32  }
0x1844   :  { %1405 = vsyncadd [#allocation4], 4294967264 }
0x1845   :  { %1056 = vsyncpa [#allocation3], 1 }
0x1846   :  { %1057 = vsyncpa [#allocation4], 1 }

</bundles_post_ra>
